<compile_context>
chip_gen: v5e
topology: v5e:2x2
jax: 0.10.0
libtpu: 0.0.40
codegen_flags: <defaults>
</compile_context>

<pallas_src>
import jax
import jax.numpy as jnp
from jax.experimental import pallas as pl
from jax.experimental.pallas import tpu as pltpu

PAD_F = 128              # lane padding for every feature dimension
BIAS_LANE = PAD_F - 1    # lane carrying the constant 1.0 (bias fold)
TILE_B = 8               # sublane tile: 8 samples per activation tile

DIMS = (17, 15, 12, 10, 7)  # fc1..fc4 in/out sizes
NUM_LAYERS = len(DIMS) - 1


def _mlp_kernel(x_ref, w_ref, o_ref):
    # Entire 4-layer MLP hot path: 4 MXU dots + 3 VPU relu's, one kernel.
    # Biases are folded into the dots via the bias lane (lane 127).
    h = x_ref[...]                                                   # (8, 128)
    h = jnp.maximum(jnp.dot(h, w_ref[0], preferred_element_type=jnp.float32), 0.0)
    h = jnp.maximum(jnp.dot(h, w_ref[1], preferred_element_type=jnp.float32), 0.0)
    h = jnp.maximum(jnp.dot(h, w_ref[2], preferred_element_type=jnp.float32), 0.0)
    o_ref[...] = jnp.dot(h, w_ref[3], preferred_element_type=jnp.float32)


def pack_params(params):
    """One-time packing: 4 (w, b) pairs -> (4, 128, 128) f32 with bias folded.

    Weight layout inside each block is (in_features, out_features) — the
    transpose of the torch nn.Linear layout.  Row BIAS_LANE holds the bias;
    W[BIAS_LANE, BIAS_LANE] = 1 propagates the constant-1 lane to the next
    layer (ReLU(1) = 1, so it survives the activations).
    """
    w_stack = jnp.zeros((NUM_LAYERS, PAD_F, PAD_F), jnp.float32)
    for i, (w, b) in enumerate(params):
        fin, fout = w.shape
        w_stack = w_stack.at[i, :fin, :fout].set(w.astype(jnp.float32))
        w_stack = w_stack.at[i, BIAS_LANE, :fout].set(b.astype(jnp.float32))
        w_stack = w_stack.at[i, BIAS_LANE, BIAS_LANE].set(1.0)
    return w_stack


def _bias_template(rows):
    # Constant (rows, 128) tile: zeros everywhere, 1.0 in the bias lane.
    # Constant-foldable under jit; filled with real features via one DUS.
    row = jnp.zeros((PAD_F,), jnp.float32).at[BIAS_LANE].set(1.0)
    return jnp.broadcast_to(row, (rows, PAD_F))


@jax.jit
def net7_forward(x, w_stack):
    """Single-sample forward (matches torch semantics: flatten -> 17 -> 7).

    x: any shape with 17 total elements. w_stack: pre-packed (4,128,128) f32.
    """
    x_flat = jnp.reshape(x, (1, -1)).astype(jnp.float32)             # (1, 17)
    x_pad = jax.lax.dynamic_update_slice(_bias_template(TILE_B), x_flat, (0, 0))

    out_pad = pl.pallas_call(
        _mlp_kernel,
        out_shape=jax.ShapeDtypeStruct((TILE_B, PAD_F), jnp.float32),
        in_specs=[pl.BlockSpec(memory_space=pltpu.MemorySpace.VMEM),
                  pl.BlockSpec(memory_space=pltpu.MemorySpace.VMEM)],
        out_specs=pl.BlockSpec(memory_space=pltpu.MemorySpace.VMEM),
        compiler_params=pltpu.CompilerParams(vmem_limit_bytes=2 * 1024 * 1024),
    )(x_pad, w_stack)

    # TODO(synk): if downstream can consume the padded (8,128) tile, drop this
    # 7-lane slice (one extra dispatch-scale op at B=1).
    return out_pad[0, : DIMS[-1]]                                    # (7,)


@jax.jit
def net7_forward_batch(xb, w_stack):
    """Batched forward: xb (B, 17) -> (B, 7).

    Grid over batch tiles of TILE_B rows; weight BlockSpec index_map is
    constant so the 256 KiB weight block stays resident across the grid.
    Batch axis is "parallel" -> shards across both v7x TensorCores.
    """
    B = xb.shape[0]
    n_tiles = pl.cdiv(B, TILE_B)
    b_pad = n_tiles * TILE_B

    x_pad = jax.lax.dynamic_update_slice(
        _bias_template(b_pad), xb.astype(jnp.float32), (0, 0))

    out_pad = pl.pallas_call(
        _mlp_kernel,
        out_shape=jax.ShapeDtypeStruct((b_pad, PAD_F), jnp.float32),
        grid=(n_tiles,),
        in_specs=[
            pl.BlockSpec((TILE_B, PAD_F), lambda b: (b, 0)),
            pl.BlockSpec((NUM_LAYERS, PAD_F, PAD_F), lambda b: (0, 0, 0)),
        ],
        out_specs=pl.BlockSpec((TILE_B, PAD_F), lambda b: (b, 0)),
        compiler_params=pltpu.CompilerParams(
            dimension_semantics=("parallel",),
            vmem_limit_bytes=4 * 1024 * 1024),
    )(x_pad, w_stack)

    return out_pad[:B, : DIMS[-1]]                                   # (B, 7)


def init_params(key):
    """Deterministic init mimicking PyTorch Linear default U(-1/sqrt(fan_in), ...).
    Weights stored as (in_features, out_features) = transpose of torch layout."""
    params = []
    for i in range(NUM_LAYERS):
        fan_in, fan_out = DIMS[i], DIMS[i + 1]
        key, kw, kb = jax.random.split(key, 3)
        bound = 1.0 / jnp.sqrt(float(fan_in))
        w = jax.random.uniform(kw, (fan_in, fan_out), jnp.float32, -bound, bound)
        b = jax.random.uniform(kb, (fan_out,), jnp.float32, -bound, bound)
        params.append((w, b))
    return params


def _reference(x, params):
    h = jnp.reshape(x, (-1,)).astype(jnp.float32)
    for i, (w, b) in enumerate(params):
        h = h @ w + b
        if i < len(params) - 1:
            h = jnp.maximum(h, 0.0)
    return h


if __name__ == "__main__":
    key = jax.random.PRNGKey(0)
    key, kx, kxb = jax.random.split(key, 3)
    # The module flattens its input to 17 elements; use a (17,) input.
    x = jax.random.normal(kx, (17,), jnp.float32)
    # Extra batched workload to exercise the gridded / parallel path.
    xb = jax.random.normal(kxb, (16, 17), jnp.float32)

    params = init_params(key)
    w_stack = jax.block_until_ready(pack_params(params))   # packed once at init

    # Single-sample path (exact module semantics).
    out = jax.block_until_ready(net7_forward(x, w_stack))
    ref = _reference(x, params)
    assert out.shape == (7,), out.shape
    assert jnp.allclose(out, ref, atol=1e-5, rtol=1e-5), (out, ref)

    # Batched path (throughput amortization per perf review).
    outb = jax.block_until_ready(net7_forward_batch(xb, w_stack))
    refb = jax.vmap(lambda xi: _reference(xi, params))(xb)
    assert outb.shape == (16, 7), outb.shape
    assert jnp.allclose(outb, refb, atol=1e-5, rtol=1e-5), (outb, refb)

    print("KERNEL_OK")
</pallas_src>

<mosaic_0001>
module attributes {stable_mosaic.version = 11 : i64} {
  func.func @_mlp_kernel(%arg0: memref<8x128xf32, #tpu.memory_space<vmem>>, %arg1: memref<4x128x128xf32, #tpu.memory_space<vmem>>, %arg2: memref<8x128xf32, #tpu.memory_space<vmem>>) attributes {dimension_semantics = [], scalar_prefetch = 0 : i64, scratch_operands = 0 : i64, tpu.core_type = #tpu.core_type<tc>} {
    %c0 = arith.constant 0 : index
    %c0_0 = arith.constant 0 : index
    %0 = vector.load %arg0[%c0, %c0_0] : memref<8x128xf32, #tpu.memory_space<vmem>>, vector<8x128xf32>
    %c0_1 = arith.constant 0 : index
    %c0_2 = arith.constant 0 : index
    %c0_3 = arith.constant 0 : index
    %1 = vector.load %arg1[%c0_1, %c0_2, %c0_3] : memref<4x128x128xf32, #tpu.memory_space<vmem>>, vector<1x128x128xf32>
    %2 = vector.shape_cast %1 : vector<1x128x128xf32> to vector<128x128xf32>
    %cst = arith.constant dense<0.000000e+00> : vector<8x128xf32>
    %3 = tpu.matmul %0, %2, %cst {dimension_numbers = #tpu.dot_dimension_numbers<[1], [0], [0], [1], [0, 0, 1, 1], [], []>} : vector<8x128xf32>, vector<128x128xf32>, vector<8x128xf32> -> vector<8x128xf32>
    %cst_4 = arith.constant 0.000000e+00 : f32
    %4 = vector.broadcast %cst_4 : f32 to vector<8x128xf32>
    %5 = arith.maximumf %3, %4 : vector<8x128xf32>
    %c1 = arith.constant 1 : index
    %c0_5 = arith.constant 0 : index
    %c0_6 = arith.constant 0 : index
    %6 = vector.load %arg1[%c1, %c0_5, %c0_6] : memref<4x128x128xf32, #tpu.memory_space<vmem>>, vector<1x128x128xf32>
    %7 = vector.shape_cast %6 : vector<1x128x128xf32> to vector<128x128xf32>
    %cst_7 = arith.constant dense<0.000000e+00> : vector<8x128xf32>
    %8 = tpu.matmul %5, %7, %cst_7 {dimension_numbers = #tpu.dot_dimension_numbers<[1], [0], [0], [1], [0, 0, 1, 1], [], []>} : vector<8x128xf32>, vector<128x128xf32>, vector<8x128xf32> -> vector<8x128xf32>
    %cst_8 = arith.constant 0.000000e+00 : f32
    %9 = vector.broadcast %cst_8 : f32 to vector<8x128xf32>
    %10 = arith.maximumf %8, %9 : vector<8x128xf32>
    %c2 = arith.constant 2 : index
    %c0_9 = arith.constant 0 : index
    %c0_10 = arith.constant 0 : index
    %11 = vector.load %arg1[%c2, %c0_9, %c0_10] : memref<4x128x128xf32, #tpu.memory_space<vmem>>, vector<1x128x128xf32>
    %12 = vector.shape_cast %11 : vector<1x128x128xf32> to vector<128x128xf32>
    %cst_11 = arith.constant dense<0.000000e+00> : vector<8x128xf32>
    %13 = tpu.matmul %10, %12, %cst_11 {dimension_numbers = #tpu.dot_dimension_numbers<[1], [0], [0], [1], [0, 0, 1, 1], [], []>} : vector<8x128xf32>, vector<128x128xf32>, vector<8x128xf32> -> vector<8x128xf32>
    %cst_12 = arith.constant 0.000000e+00 : f32
    %14 = vector.broadcast %cst_12 : f32 to vector<8x128xf32>
    %15 = arith.maximumf %13, %14 : vector<8x128xf32>
    %c3 = arith.constant 3 : index
    %c0_13 = arith.constant 0 : index
    %c0_14 = arith.constant 0 : index
    %16 = vector.load %arg1[%c3, %c0_13, %c0_14] : memref<4x128x128xf32, #tpu.memory_space<vmem>>, vector<1x128x128xf32>
    %17 = vector.shape_cast %16 : vector<1x128x128xf32> to vector<128x128xf32>
    %cst_15 = arith.constant dense<0.000000e+00> : vector<8x128xf32>
    %18 = tpu.matmul %15, %17, %cst_15 {dimension_numbers = #tpu.dot_dimension_numbers<[1], [0], [0], [1], [0, 0, 1, 1], [], []>} : vector<8x128xf32>, vector<128x128xf32>, vector<8x128xf32> -> vector<8x128xf32>
    %c0_16 = arith.constant 0 : index
    %c0_17 = arith.constant 0 : index
    %19 = vector.load %arg2[%c0_16, %c0_17] : memref<8x128xf32, #tpu.memory_space<vmem>>, vector<8x128xf32>
    tpu.vector_store %arg2[%c0_16, %c0_17], %18 {strides = array<i32>} : memref<8x128xf32, #tpu.memory_space<vmem>>, vector<8x128xf32>,
    return
  }
}

</mosaic_0001>

<bundles_post_ra>
// kernel: net7_forward.1
= control target key start
LH: loop header
LB: loop body
LE: loop exit
PB: predicated region body
PF: predicated region fallthrough
CT: control target
= control target key end

     0   :  { %7 = vsyncpa [#allocation3], 0  ;;  %s213_s12 = smov [#allocation2]   ;;  %s214_s14 = smov 128   ;;  %s240_s0 = inlined_call_operand.vmem [shape: f32[8,128], index: 0, kind: input, shape index: {}]   ;;  %s241_s1 = inlined_call_operand.hbm [shape: f32[4,128,128], index: 1, kind: input, shape index: {}]   ;;  %s242_s2 = inlined_call_operand.vmem [shape: f32[8,128], index: 2, kind: output, shape index: {}]  }
   0x1   :  { %s14_s11 = sshll.u32 %s241_s1, 4  ;;  %s16_s13 = sshll.u32 %s213_s12, 4  ;;  %s15_s11 = int_to_ptr.hbm [resolvable:$true] %s14_s11  ;;  %s17_s13 = int_to_ptr.vmem [resolvable:$true] %s16_s13 }
   0x2   :  { %s215_s15 = smov 8  }
   0x3   :  { %22 = dma.hbm_to_vmem [thread:$0]  %s15_s11, 8192, %s17_s13, [#allocation3], %s214_s14, %s214_s14, %s215_s15  }
   0x4   :  { %211 = dma.done.wait [#allocation3], 8192  }
   0x5   :  { %212 = vsyncadd [#allocation3], 4294959104  ;;  %v43_v0 = vld [vmem:[#allocation2 + $0x78] sm:$0xff]  ;;  %v42_v1 = vld [vmem:[#allocation2 + $0x70] sm:$0xff] }
   0x6   :  { %44 = vmatpush.msra.mxu0 %v43_v0  ;;  %v41_v2 = vld [vmem:[#allocation2 + $0x68] sm:$0xff]  ;;  %v40_v3 = vld [vmem:[#allocation2 + $0x60] sm:$0xff]  ;;  %v81_v4 = vld [vmem:[#allocation2 + $0xf8] sm:$0xff] }
   0x7   :  { %v39_v5 = vld [vmem:[#allocation2 + $0x58] sm:$0xff]  ;;  %82 = vmatpush.msra.mxu1 %v81_v4  ;;  %v80_v6 = vld [vmem:[#allocation2 + $0xf0] sm:$0xff]  ;;  %v79_v7 = vld [vmem:[#allocation2 + $0xe8] sm:$0xff] }
   0x8   :  { %45 = vmatpush.msra.mxu0 %v42_v1  ;;  %v38_v8 = vld [vmem:[#allocation2 + $0x50] sm:$0xff]  ;;  %v78_v9 = vld [vmem:[#allocation2 + $0xe0] sm:$0xff]  ;;  %v37_v10 = vld [vmem:[#allocation2 + $0x48] sm:$0xff] }
   0x9   :  { %83 = vmatpush.msra.mxu1 %v80_v6  ;;  %v77_v11 = vld [vmem:[#allocation2 + $0xd8] sm:$0xff]  ;;  %v36_v12 = vld [vmem:[#allocation2 + $0x40] sm:$0xff]  ;;  %v76_v13 = vld [vmem:[#allocation2 + $0xd0] sm:$0xff] }
   0xa   :  { %46 = vmatpush.msra.mxu0 %v41_v2  ;;  %v35_v14 = vld [vmem:[#allocation2 + $0x38] sm:$0xff]  ;;  %v75_v15 = vld [vmem:[#allocation2 + $0xc8] sm:$0xff]  ;;  %v34_v16 = vld [vmem:[#allocation2 + $0x30] sm:$0xff] }
   0xb   :  { %84 = vmatpush.msra.mxu1 %v79_v7  ;;  %v74_v17 = vld [vmem:[#allocation2 + $0xc0] sm:$0xff]  ;;  %v33_v18 = vld [vmem:[#allocation2 + $0x28] sm:$0xff]  ;;  %v73_v19 = vld [vmem:[#allocation2 + $0xb8] sm:$0xff] }
   0xc   :  { %47 = vmatpush.msra.mxu0 %v40_v3  ;;  %v32_v20 = vld [vmem:[#allocation2 + $0x20] sm:$0xff]  ;;  %v72_v21 = vld [vmem:[#allocation2 + $0xb0] sm:$0xff]  ;;  %v31_v22 = vld [vmem:[#allocation2 + $0x18] sm:$0xff] }
   0xd   :  { %85 = vmatpush.msra.mxu1 %v78_v9  ;;  %v71_v23 = vld [vmem:[#allocation2 + $0xa8] sm:$0xff]  ;;  %v30_v24 = vld [vmem:[#allocation2 + $0x10] sm:$0xff]  ;;  %v70_v25 = vld [vmem:[#allocation2 + $0xa0] sm:$0xff] }
   0xe   :  { %48 = vmatpush.msra.mxu0 %v39_v5  ;;  %v29_v26 = vld [vmem:[#allocation2 + $0x8] sm:$0xff]  ;;  %v69_v27 = vld [vmem:[#allocation2 + $0x98] sm:$0xff]  ;;  %v28_v28 = vld [vmem:[#allocation2] sm:$0xff] }
   0xf   :  { %86 = vmatpush.msra.mxu1 %v77_v11  ;;  %v27_v29 = vld [vmem:[%s240_s0] sm:$0xff]  ;;  %v68_v30 = vld [vmem:[#allocation2 + $0x90] sm:$0xff]  ;;  %v67_v31 = vld [vmem:[#allocation2 + $0x88] sm:$0xff] }
  0x10   :  { %49 = vmatpush.msra.mxu0 %v38_v8  ;;  %v66_v32 = vld [vmem:[#allocation2 + $0x80] sm:$0xff]  ;;  %v119_v33 = vld [vmem:[#allocation2 + $0x178] sm:$0xff]  ;;  %v118_v34 = vld [vmem:[#allocation2 + $0x170] sm:$0xff] }
  0x11   :  { %87 = vmatpush.msra.mxu1 %v76_v13  ;;  %120 = vmatpush.msra.mxu2 %v119_v33  ;;  %v117_v35 = vld [vmem:[#allocation2 + $0x168] sm:$0xff]  ;;  %v116_v36 = vld [vmem:[#allocation2 + $0x160] sm:$0xff]  ;;  %v115_v37 = vld [vmem:[#allocation2 + $0x158] sm:$0xff] }
  0x12   :  { %50 = vmatpush.msra.mxu0 %v37_v10  ;;  %v114_v38 = vld [vmem:[#allocation2 + $0x150] sm:$0xff]  ;;  %v113_v39 = vld [vmem:[#allocation2 + $0x148] sm:$0xff]  ;;  %v112_v40 = vld [vmem:[#allocation2 + $0x140] sm:$0xff] }
  0x13   :  { %88 = vmatpush.msra.mxu1 %v75_v15  ;;  %121 = vmatpush.msra.mxu2 %v118_v34  ;;  %v111_v41 = vld [vmem:[#allocation2 + $0x138] sm:$0xff]  ;;  %v110_v42 = vld [vmem:[#allocation2 + $0x130] sm:$0xff]  ;;  %v109_v43 = vld [vmem:[#allocation2 + $0x128] sm:$0xff] }
  0x14   :  { %51 = vmatpush.msra.mxu0 %v36_v12  ;;  %v108_v44 = vld [vmem:[#allocation2 + $0x120] sm:$0xff]  ;;  %v107_v45 = vld [vmem:[#allocation2 + $0x118] sm:$0xff]  ;;  %v106_v46 = vld [vmem:[#allocation2 + $0x110] sm:$0xff] }
  0x15   :  { %89 = vmatpush.msra.mxu1 %v74_v17  ;;  %122 = vmatpush.msra.mxu2 %v117_v35  ;;  %v105_v49 = vld [vmem:[#allocation2 + $0x108] sm:$0xff]  ;;  %v104_v50 = vld [vmem:[#allocation2 + $0x100] sm:$0xff]  ;;  %v157_v51 = vld [vmem:[#allocation2 + $0x1f8] sm:$0xff] }
  0x16   :  { %52 = vmatpush.msra.mxu0 %v35_v14  ;;  %v156_v52 = vld [vmem:[#allocation2 + $0x1f0] sm:$0xff]  ;;  %158 = vmatpush.msra.mxu3 %v157_v51  ;;  %v155_v53 = vld [vmem:[#allocation2 + $0x1e8] sm:$0xff]  ;;  %v154_v54 = vld [vmem:[#allocation2 + $0x1e0] sm:$0xff] }
  0x17   :  { %90 = vmatpush.msra.mxu1 %v73_v19  ;;  %123 = vmatpush.msra.mxu2 %v116_v36  ;;  %v153_v55 = vld [vmem:[#allocation2 + $0x1d8] sm:$0xff]  ;;  %v152_v56 = vld [vmem:[#allocation2 + $0x1d0] sm:$0xff]  ;;  %v151_v57 = vld [vmem:[#allocation2 + $0x1c8] sm:$0xff] }
  0x18   :  { %53 = vmatpush.msra.mxu0 %v34_v16  ;;  %159 = vmatpush.msra.mxu3 %v156_v52  ;;  %v150_v58 = vld [vmem:[#allocation2 + $0x1c0] sm:$0xff]  ;;  %v149_v59 = vld [vmem:[#allocation2 + $0x1b8] sm:$0xff]  ;;  %v148_v60 = vld [vmem:[#allocation2 + $0x1b0] sm:$0xff] }
  0x19   :  { %91 = vmatpush.msra.mxu1 %v72_v21  ;;  %124 = vmatpush.msra.mxu2 %v115_v37  ;;  %v147_v61 = vld [vmem:[#allocation2 + $0x1a8] sm:$0xff]  ;;  %v146_v62 = vld [vmem:[#allocation2 + $0x1a0] sm:$0xff]  ;;  %v145_v63 = vld [vmem:[#allocation2 + $0x198] sm:$0xff] }
  0x1a   :  { %54 = vmatpush.msra.mxu0 %v33_v18  ;;  %160 = vmatpush.msra.mxu3 %v155_v53  ;;  %v144_v0 = vld [vmem:[#allocation2 + $0x190] sm:$0xff]  ;;  %v143_v3 = vld [vmem:[#allocation2 + $0x188] sm:$0xff]  ;;  %v142_v4 = vld [vmem:[#allocation2 + $0x180] sm:$0xff] }
  0x1b   :  { %92 = vmatpush.msra.mxu1 %v71_v23  ;;  %125 = vmatpush.msra.mxu2 %v114_v38 }
  0x1c   :  { %55 = vmatpush.msra.mxu0 %v32_v20  ;;  %161 = vmatpush.msra.mxu3 %v154_v54 }
  0x1d   :  { %93 = vmatpush.msra.mxu1 %v70_v25  ;;  %126 = vmatpush.msra.mxu2 %v113_v39 }
  0x1e   :  { %56 = vmatpush.msra.mxu0 %v31_v22  ;;  %162 = vmatpush.msra.mxu3 %v153_v55 }
  0x1f   :  { %94 = vmatpush.msra.mxu1 %v69_v27  ;;  %127 = vmatpush.msra.mxu2 %v112_v40 }
  0x20   :  { %57 = vmatpush.msra.mxu0 %v30_v24  ;;  %163 = vmatpush.msra.mxu3 %v152_v56 }
  0x21   :  { %95 = vmatpush.msra.mxu1 %v68_v30  ;;  %128 = vmatpush.msra.mxu2 %v111_v41 }
  0x22   :  { %58 = vmatpush.msra.mxu0 %v29_v26  ;;  %164 = vmatpush.msra.mxu3 %v151_v57 }
  0x23   :  { %96 = vmatpush.msra.mxu1 %v67_v31  ;;  %129 = vmatpush.msra.mxu2 %v110_v42 }
  0x24   :  { %59 = vmatpush.msra.mxu0 %v28_v28  ;;  %165 = vmatpush.msra.mxu3 %v150_v58 }
  0x25   :  { %60 = vmatmul.f32.vlgmr.msra.gmra.mxu0 %v27_v29  ;;  %97 = vmatpush.msra.mxu1 %v66_v32 }
  0x26   :  { %130 = vmatpush.msra.mxu2 %v109_v43  ;;  %166 = vmatpush.msra.mxu3 %v149_v59 }
  0x28   :  { %131 = vmatpush.msra.mxu2 %v108_v44  ;;  %167 = vmatpush.msra.mxu3 %v148_v60 }
  0x2a   :  { %132 = vmatpush.msra.mxu2 %v107_v45  ;;  %168 = vmatpush.msra.mxu3 %v147_v61 }
  0x2c   :  { %133 = vmatpush.msra.mxu2 %v106_v46  ;;  %169 = vmatpush.msra.mxu3 %v146_v62 }
  0x2e   :  { %134 = vmatpush.msra.mxu2 %v105_v49  ;;  %170 = vmatpush.msra.mxu3 %v145_v63 }
  0x30   :  { %135 = vmatpush.msra.mxu2 %v104_v50  ;;  %171 = vmatpush.msra.mxu3 %v144_v0 }
  0x32   :  { %172 = vmatpush.msra.mxu3 %v143_v3 }
  0x34   :  { %173 = vmatpush.msra.mxu3 %v142_v4 }
  0xa2   :  { %v61_v47 = vpop.f32.mrf.mxu0 }
  0xa3   :  { %v64_v48 = vmax.f32 %v61_v47, 0.0 }
  0xa5   :  { %98 = vmatmul.f32.vlgmr.msra.gmra.mxu1 %v64_v48 }
 0x122   :  { %v99_v1 = vpop.f32.mrf.mxu1 }
 0x123   :  { %v102_v2 = vmax.f32 %v99_v1, 0.0 }
 0x125   :  { %136 = vmatmul.f32.vlgmr.msra.gmra.mxu2 %v102_v2 }
 0x1a8   :  { %v137_v5 = vpop.f32.mrf.mxu2 }
 0x1a9   :  { %v140_v6 = vmax.f32 %v137_v5, 0.0 }
 0x1ab   :  { %174 = vmatmul.f32.vlgmr.msra.gmra.mxu3 %v140_v6 }
 0x22e   :  { %v175_v7 = vpop.f32.mrf.mxu3 }
 0x22f   :  { %178 = vst [vmem:[%s242_s2] sm:$0xff] %v175_v7 }
 0x230   :  { %183 = vsyncpa [#allocation3], 1 }

</bundles_post_ra>
